<compile_context>
chip_gen: v6e
topology: v6e:2x2x1
jax: 0.10.0
libtpu: 0.0.40
codegen_flags: <defaults>
</compile_context>

<pallas_src>
import functools

import jax
import jax.numpy as jnp
from jax.experimental import pallas as pl
from jax.experimental.pallas import tpu as pltpu

_LANES = 128
# ~4 MiB (f32) per input per grid step.
_DEFAULT_BLOCK_ROWS = 8192
# Rows of the vreg-resident per-step partial (16 vregs per partial, 32 total).
_ACC_ROWS = 128
# Double-buffered inputs at the default tile are 16 MiB (f32); 48 MiB leaves
# headroom on v5e/v6e and stays under v7x's 64 MiB physical VMEM.
_VMEM_LIMIT_BYTES = 48 * 1024 * 1024


def _dice_kernel(x_ref, t_ref, o_ref, inter_acc, denom_acc, *,
                 valid_rows, block_rows, acc_rows, steps_per_core,
                 emit_mask_path):
    i = pl.program_id(1)                      # step within this core's range
    n_chunks = block_rows // acc_rows

    @pl.when(i == 0)
    def _():
        inter_acc[...] = jnp.zeros_like(inter_acc)
        denom_acc[...] = jnp.zeros_like(denom_acc)

    def accumulate(masked, row_base):
        # Fold the (block_rows, 128) tile into (acc_rows, 128) partials that
        # stay in vregs; the VMEM accumulators are touched once per step.
        p_inter = jnp.zeros((acc_rows, _LANES), jnp.float32)
        p_denom = jnp.zeros((acc_rows, _LANES), jnp.float32)
        for j in range(n_chunks):
            sl = pl.ds(j * acc_rows, acc_rows)
            x = x_ref[sl, :].astype(jnp.float32)
            t = t_ref[sl, :].astype(jnp.float32)
            if masked:
                row = (row_base + j * acc_rows
                       + jax.lax.broadcasted_iota(jnp.int32,
                                                  (acc_rows, _LANES), 0))
                keep = row < valid_rows
                x = jnp.where(keep, x, 0.0)
                t = jnp.where(keep, t, 0.0)
            p_inter = p_inter + x * t
            p_denom = p_denom + (x + t)
        inter_acc[...] += p_inter
        denom_acc[...] += p_denom

    # Global block index along the row dimension.
    b = pl.program_id(0) * steps_per_core + i

    if emit_mask_path:
        # Only blocks that reach past the last valid row (the ragged tail, or
        # a fully-out-of-range block when the 2-core split is uneven) pay for
        # the row mask; all steady-state steps take the unmasked fast path.
        ragged = (b + 1) * block_rows > valid_rows

        @pl.when(ragged)
        def _():
            accumulate(True, b * block_rows)

        @pl.when(jnp.logical_not(ragged))
        def _():
            accumulate(False, 0)
    else:
        accumulate(False, 0)

    @pl.when(i == pl.num_programs(1) - 1)
    def _():
        inter = jnp.sum(inter_acc[...])
        denom = jnp.sum(denom_acc[...])
        lane = jax.lax.broadcasted_iota(jnp.int32, (8, _LANES), 1)
        # Lane 0 carries this core's intersection partial, lane 1 the
        # (sum(x)+sum(t)) partial; the host combines the per-core rows.
        o_ref[0] = jnp.where(lane == 0, inter,
                             jnp.where(lane == 1, denom, 0.0))


def dice(inputs, targets, smooth=1.0, *, block_rows=_DEFAULT_BLOCK_ROWS):
    """Pallas TPU Dice score. Accepts any-shaped inputs/targets (same shape)."""
    assert inputs.shape == targets.shape, "inputs/targets must have same shape"

    n = int(inputs.size)
    rows = pl.cdiv(n, _LANES)

    def _to_2d(a):
        a = jnp.ravel(a)                      # copy-free for contiguous arrays
        if n % _LANES != 0:
            # TODO(synk): an in-kernel lane-tail mask would avoid this copy;
            # element counts that are multiples of 128 never hit it.
            a = jnp.pad(a, (0, rows * _LANES - n))
        return a.reshape(rows, _LANES)

    x2d = _to_2d(inputs)
    t2d = _to_2d(targets)

    # Row tile: as large as requested, clamped to the array; multiples of 32
    # keep packed (bf16/int8/fp8) sublane layouts native.
    bm = min(int(block_rows), rows)
    if bm < rows:
        bm = (bm // 32) * 32
        if bm <= 0:
            bm = rows

    steps_total = pl.cdiv(rows, bm)
    # Leading "parallel" axis: sharded across the 2 TensorCores on v7x; on
    # 1-TC chips it simply iterates (at most one extra fully-masked block).
    num_cores = 2 if steps_total > 1 else 1
    steps_per_core = pl.cdiv(steps_total, num_cores)

    acc_rows = _ACC_ROWS if (bm % _ACC_ROWS == 0 and bm > _ACC_ROWS) else bm

    # Mask code is only traced in if some block extends past the last row.
    emit_mask_path = (num_cores * steps_per_core * bm) != rows
    last_block = steps_total - 1

    if num_cores * steps_per_core == steps_total:
        def in_map(c, i):
            return (c * steps_per_core + i, 0)
    else:
        def in_map(c, i):
            # A core whose range over-runs the array (odd steps_total) re-reads
            # the last valid block; its rows are masked to zero in-kernel.
            return (jnp.minimum(c * steps_per_core + i, last_block), 0)

    kernel = functools.partial(
        _dice_kernel,
        valid_rows=rows,
        block_rows=bm,
        acc_rows=acc_rows,
        steps_per_core=steps_per_core,
        emit_mask_path=emit_mask_path,
    )

    out = pl.pallas_call(
        kernel,
        out_shape=jax.ShapeDtypeStruct((num_cores, 8, _LANES), jnp.float32),
        grid_spec=pltpu.PrefetchScalarGridSpec(
            num_scalar_prefetch=0,
            grid=(num_cores, steps_per_core),
            in_specs=[
                pl.BlockSpec((bm, _LANES), in_map),
                pl.BlockSpec((bm, _LANES), in_map),
            ],
            out_specs=pl.BlockSpec((1, 8, _LANES), lambda c, i: (c, 0, 0)),
            scratch_shapes=[
                pltpu.VMEM((acc_rows, _LANES), jnp.float32),  # sum(x * t)
                pltpu.VMEM((acc_rows, _LANES), jnp.float32),  # sum(x) + sum(t)
            ],
        ),
        compiler_params=pltpu.CompilerParams(
            dimension_semantics=("parallel", "arbitrary"),
            vmem_limit_bytes=_VMEM_LIMIT_BYTES,
        ),
    )(x2d, t2d)

    # Combine per-core partials and apply smooth on the host; `smooth` stays a
    # traced value so distinct smooth values do not retrigger compilation.
    inter = jnp.sum(out[:, 0, 0])
    denom = jnp.sum(out[:, 0, 1])
    smooth = jnp.asarray(smooth, jnp.float32)
    return (2.0 * inter + smooth) / (denom + smooth)


def _dice_ref(inputs, targets, smooth=1.0):
    inputs = inputs.astype(jnp.float32)
    targets = targets.astype(jnp.float32)
    inter = jnp.sum(inputs * targets)
    return (2.0 * inter + smooth) / (jnp.sum(inputs) + jnp.sum(targets) + smooth)


if __name__ == "__main__":
    key = jax.random.PRNGKey(0)
    k1, k2, k3, k4 = jax.random.split(key, 4)

    # Small NCHW-like prediction / target masks.
    shape = (2, 4, 16, 16)
    inputs = jax.nn.sigmoid(jax.random.normal(k1, shape, dtype=jnp.float32))
    targets = (jax.random.uniform(k2, shape) > 0.5).astype(jnp.float32)

    got = jax.block_until_ready(dice(inputs, targets, smooth=1.0))
    want = jax.block_until_ready(_dice_ref(inputs, targets, smooth=1.0))
    assert jnp.allclose(got, want, rtol=1e-5, atol=1e-5), (got, want)

    # Exercise the multi-block / two-core / ragged-tail paths at a small size.
    shape2 = (2, 3, 32, 32)            # 6144 elems -> 48 rows of 128 lanes
    a2 = jax.nn.sigmoid(jax.random.normal(k3, shape2, dtype=jnp.float32))
    b2 = (jax.random.uniform(k4, shape2) > 0.5).astype(jnp.float32)
    got2 = jax.block_until_ready(dice(a2, b2, smooth=1.0, block_rows=32))
    want2 = jax.block_until_ready(_dice_ref(a2, b2, smooth=1.0))
    assert jnp.allclose(got2, want2, rtol=1e-5, atol=1e-5), (got2, want2)

    print("KERNEL_OK")
</pallas_src>

<mosaic_0001>
module attributes {stable_mosaic.version = 11 : i64} {
  func.func @_dice_kernel(%arg0: i32, %arg1: i32, %arg2: memref<16x128xf32, #tpu.memory_space<vmem>>, %arg3: memref<16x128xf32, #tpu.memory_space<vmem>>, %arg4: memref<1x8x128xf32, #tpu.memory_space<vmem>>, %arg5: memref<16x128xf32, #tpu.memory_space<vmem>>, %arg6: memref<16x128xf32, #tpu.memory_space<vmem>>) attributes {dimension_semantics = [#tpu.dimension_semantics<parallel>, #tpu.dimension_semantics<arbitrary>], iteration_bounds = array<i64: 1, 1>, scalar_prefetch = 0 : i64, scratch_operands = 2 : i64, tpu.core_type = #tpu.core_type<tc>, window_params = [{transform_indices = @transform_0, window_bounds = array<i64: 16, 128>}, {transform_indices = @transform_1, window_bounds = array<i64: 16, 128>}, {transform_indices = @transform_2, window_bounds = array<i64: 1, 8, 128>}]} {
    %c0_i32 = arith.constant 0 : i32
    %0 = arith.cmpi eq, %arg1, %c0_i32 : i32
    %1 = arith.extui %0 : i1 to i32
    %c0_i32_0 = arith.constant 0 : i32
    %2 = arith.cmpi ne, %1, %c0_i32_0 : i32
    scf.if %2 {
      %cst_15 = arith.constant 0.000000e+00 : f32
      %20 = vector.broadcast %cst_15 : f32 to vector<16x128xf32>
      %c0_16 = arith.constant 0 : index
      %c0_17 = arith.constant 0 : index
      %21 = vector.load %arg5[%c0_16, %c0_17] : memref<16x128xf32, #tpu.memory_space<vmem>>, vector<16x128xf32>
      tpu.vector_store %arg5[%c0_16, %c0_17], %20 {strides = array<i32>} : memref<16x128xf32, #tpu.memory_space<vmem>>, vector<16x128xf32>,
      %cst_18 = arith.constant 0.000000e+00 : f32
      %22 = vector.broadcast %cst_18 : f32 to vector<16x128xf32>
      %c0_19 = arith.constant 0 : index
      %c0_20 = arith.constant 0 : index
      %23 = vector.load %arg6[%c0_19, %c0_20] : memref<16x128xf32, #tpu.memory_space<vmem>>, vector<16x128xf32>
      tpu.vector_store %arg6[%c0_19, %c0_20], %22 {strides = array<i32>} : memref<16x128xf32, #tpu.memory_space<vmem>>, vector<16x128xf32>,
    } else {
    }
    %cst = arith.constant 0.000000e+00 : f32
    %3 = vector.broadcast %cst : f32 to vector<16x128xf32>
    %cst_1 = arith.constant 0.000000e+00 : f32
    %4 = vector.broadcast %cst_1 : f32 to vector<16x128xf32>
    %c0 = arith.constant 0 : index
    %c0_2 = arith.constant 0 : index
    %5 = vector.load %arg2[%c0, %c0_2] : memref<16x128xf32, #tpu.memory_space<vmem>>, vector<16x128xf32>
    %c0_3 = arith.constant 0 : index
    %c0_4 = arith.constant 0 : index
    %6 = vector.load %arg3[%c0_3, %c0_4] : memref<16x128xf32, #tpu.memory_space<vmem>>, vector<16x128xf32>
    %7 = arith.mulf %5, %6 : vector<16x128xf32>
    %8 = arith.addf %3, %7 : vector<16x128xf32>
    %9 = arith.addf %5, %6 : vector<16x128xf32>
    %10 = arith.addf %4, %9 : vector<16x128xf32>
    %c0_5 = arith.constant 0 : index
    %c0_6 = arith.constant 0 : index
    %11 = vector.load %arg5[%c0_5, %c0_6] : memref<16x128xf32, #tpu.memory_space<vmem>>, vector<16x128xf32>
    %12 = arith.addf %11, %8 : vector<16x128xf32>
    %c0_7 = arith.constant 0 : index
    %c0_8 = arith.constant 0 : index
    %13 = vector.load %arg5[%c0_7, %c0_8] : memref<16x128xf32, #tpu.memory_space<vmem>>, vector<16x128xf32>
    tpu.vector_store %arg5[%c0_7, %c0_8], %12 {strides = array<i32>} : memref<16x128xf32, #tpu.memory_space<vmem>>, vector<16x128xf32>,
    %c0_9 = arith.constant 0 : index
    %c0_10 = arith.constant 0 : index
    %14 = vector.load %arg6[%c0_9, %c0_10] : memref<16x128xf32, #tpu.memory_space<vmem>>, vector<16x128xf32>
    %15 = arith.addf %14, %10 : vector<16x128xf32>
    %c0_11 = arith.constant 0 : index
    %c0_12 = arith.constant 0 : index
    %16 = vector.load %arg6[%c0_11, %c0_12] : memref<16x128xf32, #tpu.memory_space<vmem>>, vector<16x128xf32>
    tpu.vector_store %arg6[%c0_11, %c0_12], %15 {strides = array<i32>} : memref<16x128xf32, #tpu.memory_space<vmem>>, vector<16x128xf32>,
    %c0_i32_13 = arith.constant 0 : i32
    %17 = arith.cmpi eq, %arg1, %c0_i32_13 : i32
    %18 = arith.extui %17 : i1 to i32
    %c0_i32_14 = arith.constant 0 : i32
    %19 = arith.cmpi ne, %18, %c0_i32_14 : i32
    scf.if %19 {
      %c0_15 = arith.constant 0 : index
      %c0_16 = arith.constant 0 : index
      %20 = vector.load %arg5[%c0_15, %c0_16] : memref<16x128xf32, #tpu.memory_space<vmem>>, vector<16x128xf32>
      %21 = vector.shape_cast %20 : vector<16x128xf32> to vector<1x16x128xf32>
      %cst_17 = arith.constant dense<0.000000e+00> : vector<1xf32>
      %22 = vector.multi_reduction <add>, %21, %cst_17 [1, 2] : vector<1x16x128xf32> to vector<1xf32>
      %23 = vector.shape_cast %22 : vector<1xf32> to vector<1x1x1xf32>
      %24 = vector.extract %23[0, 0, 0] : f32 from vector<1x1x1xf32>
      %c0_18 = arith.constant 0 : index
      %c0_19 = arith.constant 0 : index
      %25 = vector.load %arg6[%c0_18, %c0_19] : memref<16x128xf32, #tpu.memory_space<vmem>>, vector<16x128xf32>
      %26 = vector.shape_cast %25 : vector<16x128xf32> to vector<1x16x128xf32>
      %cst_20 = arith.constant dense<0.000000e+00> : vector<1xf32>
      %27 = vector.multi_reduction <add>, %26, %cst_20 [1, 2] : vector<1x16x128xf32> to vector<1xf32>
      %28 = vector.shape_cast %27 : vector<1xf32> to vector<1x1x1xf32>
      %29 = vector.extract %28[0, 0, 0] : f32 from vector<1x1x1xf32>
      %30 = tpu.iota {dimensions = array<i32: 1>} : vector<8x128xi32>
      %c0_i32_21 = arith.constant 0 : i32
      %31 = vector.broadcast %c0_i32_21 : i32 to vector<8x128xi32>
      %32 = arith.cmpi eq, %30, %31 : vector<8x128xi32>
      %c1_i32 = arith.constant 1 : i32
      %33 = vector.broadcast %c1_i32 : i32 to vector<8x128xi32>
      %34 = arith.cmpi eq, %30, %33 : vector<8x128xi32>
      %cst_22 = arith.constant 0.000000e+00 : f32
      %35 = vector.broadcast %29 : f32 to vector<8x128xf32>
      %36 = vector.broadcast %cst_22 : f32 to vector<8x128xf32>
      %37 = arith.select %34, %35, %36 : vector<8x128xi1>, vector<8x128xf32>
      %38 = vector.broadcast %24 : f32 to vector<8x128xf32>
      %39 = arith.select %32, %38, %37 : vector<8x128xi1>, vector<8x128xf32>
      %c0_23 = arith.constant 0 : index
      %c0_24 = arith.constant 0 : index
      %c0_25 = arith.constant 0 : index
      %40 = vector.load %arg4[%c0_23, %c0_24, %c0_25] : memref<1x8x128xf32, #tpu.memory_space<vmem>>, vector<1x8x128xf32>
      %41 = vector.shape_cast %40 : vector<1x8x128xf32> to vector<8x128xf32>
      %42 = vector.shape_cast %39 : vector<8x128xf32> to vector<1x8x128xf32>
      tpu.vector_store %arg4[%c0_23, %c0_24, %c0_25], %42 {strides = array<i32>} : memref<1x8x128xf32, #tpu.memory_space<vmem>>, vector<1x8x128xf32>,
    } else {
    }
    return
  }
  func.func @transform_0(%arg0: i32, %arg1: i32) -> (i32, i32) {
    %c1_i32 = arith.constant 1 : i32
    %0 = arith.muli %arg0, %c1_i32 : i32
    %1 = arith.addi %0, %arg1 : i32
    %c0_i32 = arith.constant 0 : i32
    %c0_i32_0 = arith.constant 0 : i32
    return %1, %c0_i32 : i32, i32
  }
  func.func @transform_1(%arg0: i32, %arg1: i32) -> (i32, i32) {
    %c1_i32 = arith.constant 1 : i32
    %0 = arith.muli %arg0, %c1_i32 : i32
    %1 = arith.addi %0, %arg1 : i32
    %c0_i32 = arith.constant 0 : i32
    %c0_i32_0 = arith.constant 0 : i32
    return %1, %c0_i32 : i32, i32
  }
  func.func @transform_2(%arg0: i32, %arg1: i32) -> (i32, i32, i32) {
    %c0_i32 = arith.constant 0 : i32
    %c0_i32_0 = arith.constant 0 : i32
    %c0_i32_1 = arith.constant 0 : i32
    return %arg0, %c0_i32, %c0_i32_0 : i32, i32, i32
  }
}

</mosaic_0001>

<bundles_post_ra>
// kernel: tpu_custom_call.1
= control target key start
LH: loop header
LB: loop body
LE: loop exit
PB: predicated region body
PF: predicated region fallthrough
CT: control target
= control target key end

     0   :  { %7 = vsyncpa [#allocation5], 0  ;;  %s240_s0 = inlined_call_operand.hbm [shape: f32[16,128], index: 0, kind: input, shape index: {}]   ;;  %s241_s1 = inlined_call_operand.hbm [shape: f32[16,128], index: 1, kind: input, shape index: {}]   ;;  %s242_s2 = inlined_call_operand.hbm [shape: f32[1,8,128], index: 2, kind: output, shape index: {}]  }
   0x1   :  { %8 = vsyncpa [#allocation8], 0 }
   0x2   :  { %9 = vsyncpa [#allocation6], 0  ;;  %s211_s9 = smov [#allocation4]  }
   0x3   :  { %s19_s10 = sshll.u32 %s211_s9, 4  ;;  %s20_s10 = int_to_ptr.vmem [resolvable:$true] %s19_s10 }
   0x4   :  { %s153_s11 = scalar_lea.vmem %s20_s10, 256  ;;  %p158_p1 = scmp.lt.s32.totalorder %s20_s10, %s20_s10 }
   0x5   :  { %p154_p0 = scmp.ne.s32.totalorder %s20_s10, %s153_s11  ;;  %p159_p2 = scmp.lt.s32.totalorder %s153_s11, %s153_s11 }
   0x7   :  { %p160_p3 = por %p159_p2, %p158_p1 }
   0x9   :  { %p161_p4 = pnand %p160_p3, %p154_p0 }
   0xb   :  { %164 = shalt.err (!%p161_p4)
}
   0xc   :  { %s212_s12 = smov 128   ;;  %s213_s13 = smov 8  }
   0xd   :  { %25 = dma.hbm_to_vmem [thread:$0]  %s240_s0, 256, %s20_s10, [#allocation5], %s212_s12, %s212_s12, %s213_s13  }
   0xe   :  { %s214_s16 = smov [#allocation7]  }
   0xf   :  { %s35_s17 = sshll.u32 %s214_s16, 4  ;;  %s36_s17 = int_to_ptr.vmem [resolvable:$true] %s35_s17 }
  0x10   :  { %s173_s18 = scalar_lea.vmem %s36_s17, 256  ;;  %p178_p6 = scmp.lt.s32.totalorder %s36_s17, %s36_s17 }
  0x11   :  { %p174_p5 = scmp.ne.s32.totalorder %s36_s17, %s173_s18  ;;  %p179_p7 = scmp.lt.s32.totalorder %s173_s18, %s173_s18 }
  0x13   :  { %p180_p8 = por %p179_p7, %p178_p6 }
  0x15   :  { %p181_p9 = pnand %p180_p8, %p174_p5 }
  0x17   :  { %184 = shalt.err (!%p181_p9)
}
  0x18   :  { %41 = dma.hbm_to_vmem [thread:$0]  %s241_s1, 256, %s36_s17, [#allocation8], %s212_s12, %s212_s12, %s213_s13  }
  0x19   :  { %205 = dma.done.wait [#allocation5], 256  }
  0x1a   :  { %206 = vsyncadd [#allocation5], 4294967040 }
  0x1b   :  { %207 = dma.done.wait [#allocation8], 256  }
  0x1c   :  { %208 = vsyncadd [#allocation8], 4294967040  ;;  %v60_v0 = vld [vmem:[#allocation4] sm:$0xff]  ;;  %v61_v1 = vld [vmem:[#allocation4 + $0x8] sm:$0xff]  ;;  %v111_v24 = vlaneseq  ;;  %s215_s1 = smov [#allocation9]  }
  0x1d   :  { %v62_v2 = vld [vmem:[#allocation7] sm:$0xff]  ;;  %v63_v3 = vld [vmem:[#allocation7 + $0x8] sm:$0xff]  ;;  %s126_s21 = sshll.u32 %s215_s1, 4  ;;  %s127_s21 = int_to_ptr.vmem [resolvable:$true] %s126_s21 }
  0x1e   :  { %v64_v4 = vmul.f32 %v62_v2, %v60_v0  ;;  %v65_v5 = vmul.f32 %v63_v3, %v61_v1  ;;  %v68_v6 = vadd.f32 %v62_v2, %v60_v0  ;;  %v69_v7 = vadd.f32 %v63_v3, %v61_v1  ;;  %s185_s23 = scalar_lea.vmem %s127_s21, 128  ;;  %p190_p11 = scmp.lt.s32.totalorder %s127_s21, %s127_s21 }
  0x1f   :  { %v112_v25 = vand.u32 127, %v111_v24  ;;  %p186_p10 = scmp.ne.s32.totalorder %s127_s21, %s185_s23  ;;  %p191_p12 = scmp.lt.s32.totalorder %s185_s23, %s185_s23 }
  0x20   :  { %v89_v8 = vadd.f32 %v65_v5, %v64_v4  ;;  %v101_v9 = vadd.f32 %v69_v7, %v68_v6 }
  0x21   :  { %vm114_vm0 = vcmp.eq.s32.totalorder %v112_v25, 1  ;;  %vm113_vm1 = vcmp.eq.s32.totalorder %v112_v25, 0  ;;  %p192_p13 = por %p191_p12, %p190_p11 }
  0x22   :  { %90 = vadd.xlane.f32.xlu0 %v89_v8 }
  0x23   :  { %p193_p0 = pnand %p192_p13, %p186_p10 }
  0x26   :  { %102 = vadd.xlane.f32.xlu0 %v101_v9 }
  0xab   :  { %v91_v10 = vpop.xlane.xlu0 %90 }
  0xac   :  { %v92_v11 = vrot.slane %v91_v10, 4 }
  0xae   :  { %v93_v12 = vadd.f32 %v92_v11, %v91_v10 }
  0xaf   :  { %v103_v13 = vpop.xlane.xlu0 %102 }
  0xb0   :  { %v94_v14 = vrot.slane %v93_v12, 2  ;;  %v104_v15 = vrot.slane %v103_v13, 4 }
  0xb2   :  { %v105_v16 = vadd.f32 %v104_v15, %v103_v13  ;;  %v95_v17 = vadd.f32 %v94_v14, %v93_v12 }
  0xb4   :  { %v106_v18 = vrot.slane %v105_v16, 2  ;;  %v96_v19 = vrot.slane %v95_v17, 1 }
  0xb6   :  { %v107_v20 = vadd.f32 %v106_v18, %v105_v16  ;;  %v97_v21 = vadd.f32 %v96_v19, %v95_v17 }
  0xb8   :  { %136 = vpush %v97_v21  ;;  %v108_v22 = vrot.slane %v107_v20, 1 }
  0xba   :  { %v109_v23 = vadd.f32 %v108_v22, %v107_v20 }
  0xbc   :  { %138 = vpush %v109_v23 }
  0xe9   :  { %s137_s0 = spop %136 }
  0xea   :  { %v117_v27 = vstv %s137_s0 }
  0xed   :  { %s139_s22 = spop %138 }
  0xee   :  { %v115_v26 = vstv %s139_s22 }
  0xef   :  { %v116_v28 = vsel %vm114_vm0, %v115_v26, 0.0 }
  0xf0   :  { %v118_v29 = vsel %vm113_vm1, %v117_v27, %v116_v28 }
  0xf1   :  { %119 = vst [vmem:[#allocation9] sm:$0xff] %v118_v29 }
  0xf2   :  { %196 = shalt.err (!%p193_p0)
}
  0xf3   :  { %129 = dma.vmem_to_hbm [thread:$0]  %s127_s21, 128, %s242_s2, [#allocation6]  }
  0xf4   :  { %209 = dma.done.wait [#allocation6], 128  }
  0xf5   :  { %210 = vsyncadd [#allocation6], 4294967168 }
  0xf6   :  { %133 = vsyncpa [#allocation5], 1 }
  0xf7   :  { %134 = vsyncpa [#allocation8], 1 }
  0xf8   :  { %135 = vsyncpa [#allocation6], 1 }

</bundles_post_ra>
